<compile_context>
chip_gen: v5e
topology: v5e:2x2
jax: 0.10.0
libtpu: 0.0.40
codegen_flags: <defaults>
</compile_context>

<pallas_src>
import functools
import math

import jax
import jax.numpy as jnp
from jax.experimental import pallas as pl
from jax.experimental.pallas import tpu as pltpu


def _decode_topk_kernel(size_ref, logit_ref, raw_ref, score_ref, box_ref, *,
                        stride):
    """One grid step == one image; only the k selected candidates of one level.

    size_ref  : SMEM (2*N,) int32, flattened (h0, w0, h1, w1, ...)  [scalar prefetch]
    logit_ref : VMEM (1, 1, K) raw top-k classification logits
    raw_ref   : VMEM (1, 4, K) gathered raw regression values, planes (y1, x1, y2, x2)
    score_ref : VMEM (1, 1, K) f32 sigmoid scores of the survivors
    box_ref   : VMEM (1, 4, K) f32 decoded boxes, planes (x1, y1, x2, y2), clipped
    """
    b = pl.program_id(0)
    h = size_ref[2 * b].astype(jnp.float32)
    w = size_ref[2 * b + 1].astype(jnp.float32)
    s = jnp.float32(stride)

    # Sigmoid only on the k survivors (monotonic, so top-k/threshold order-safe).
    score_ref[...] = jax.nn.sigmoid(logit_ref[...].astype(jnp.float32))

    # detections = min(detections.view(-1, 2) * stride, (h, w))
    y1 = jnp.minimum(raw_ref[:, 0:1, :].astype(jnp.float32) * s, h)
    x1 = jnp.minimum(raw_ref[:, 1:2, :].astype(jnp.float32) * s, w)
    y2 = jnp.minimum(raw_ref[:, 2:3, :].astype(jnp.float32) * s, h)
    x2 = jnp.minimum(raw_ref[:, 3:4, :].astype(jnp.float32) * s, w)
    # after (y1,x1,y2,x2) -> (x1,y1,x2,y2): [:, 2:] = max([:, :2], [:, 2:])
    x2 = jnp.maximum(x1, x2)
    y2 = jnp.maximum(y1, y2)
    # fused BoxList.clip_to_image(remove_empty=False)   (TO_REMOVE = 1)
    x1 = jnp.clip(x1, 0.0, w - 1.0)
    y1 = jnp.clip(y1, 0.0, h - 1.0)
    x2 = jnp.clip(x2, 0.0, w - 1.0)
    y2 = jnp.clip(y2, 0.0, h - 1.0)

    box_ref[:, 0:1, :] = x1
    box_ref[:, 1:2, :] = y1
    box_ref[:, 2:3, :] = x2
    box_ref[:, 3:4, :] = y2


def _decode_selected(top_logits, raw_boxes, image_sizes_flat, stride):
    """Pallas call over the (tiny) selected candidates of one level.

    top_logits: (N, K) raw logits of the top-k candidates
    raw_boxes : (N, 4, K) raw regression values gathered at those locations
    Returns (scores (N, K) f32, boxes (N, 4, K) f32).
    """
    N, k = top_logits.shape
    kernel = functools.partial(_decode_topk_kernel, stride=float(stride))

    scores, boxes = pl.pallas_call(
        kernel,
        out_shape=(
            jax.ShapeDtypeStruct((N, 1, k), jnp.float32),
            jax.ShapeDtypeStruct((N, 4, k), jnp.float32),
        ),
        grid_spec=pltpu.PrefetchScalarGridSpec(
            num_scalar_prefetch=1,            # flattened image sizes -> SMEM
            grid=(N,),
            in_specs=[
                pl.BlockSpec((1, 1, k), lambda b, sizes: (b, 0, 0)),
                pl.BlockSpec((1, 4, k), lambda b, sizes: (b, 0, 0)),
            ],
            out_specs=(
                pl.BlockSpec((1, 1, k), lambda b, sizes: (b, 0, 0)),
                pl.BlockSpec((1, 4, k), lambda b, sizes: (b, 0, 0)),
            ),
        ),
        compiler_params=pltpu.CompilerParams(
            dimension_semantics=("parallel",)),
    )(image_sizes_flat, top_logits.reshape(N, 1, k), raw_boxes)

    return scores.reshape(N, k), boxes


def pdnet_level_candidates(cls_l, bbox_l, image_sizes_flat, stride,
                           pre_nms_top_n):
    """One FPN level: top-k on raw logits + sparse gather + Pallas decode.

    Returns (top_logits f32 (N,K), scores (N,K), boxes (N,K,4), labels (N,K)).
    """
    N, C, H, W = cls_l.shape
    HW = H * W
    k = min(int(pre_nms_top_n), C * HW)

    # Sigmoid is monotonic: candidate selection works on raw logits, channel-major
    # flat index -> (label, location).  No dense sigmoid, no dense score tensor.
    flat_logits = cls_l.reshape(N, C * HW)            # row-major merge, no copy
    top_logits, top_idx = jax.lax.top_k(flat_logits, k)
    loc = top_idx % HW                                 # bbox_loc_per_img
    labels = top_idx // HW + 1                         # cls_label_per_img

    # Late decode: gather only the 4*k raw regression values at the selected
    # locations; the per-element decode is identical to the dense one.
    bbox_flat = bbox_l.reshape(N, 4, HW)
    raw = jnp.take_along_axis(
        bbox_flat, jnp.broadcast_to(loc[:, None, :], (N, 4, k)), axis=2)

    scores, boxes_4k = _decode_selected(top_logits, raw, image_sizes_flat,
                                        stride)
    boxes = jnp.transpose(boxes_4k, (0, 2, 1))         # (N, k, 4), tiny
    return top_logits.astype(jnp.float32), scores, boxes, labels


def pdnet_postprocess(cls_scores, reg_boxes, image_sizes_i32, strides,
                      pre_nms_thresh, pre_nms_top_n, min_size):
    """forward(): per-level candidate selection + decode, concat over levels."""
    image_sizes_flat = jnp.asarray(image_sizes_i32, jnp.int32).reshape(-1)

    # sigmoid(x) > t  <=>  x > log(t / (1 - t))
    if pre_nms_thresh <= 0.0:
        logit_thresh = -float("inf")
    elif pre_nms_thresh >= 1.0:
        logit_thresh = float("inf")
    else:
        logit_thresh = math.log(pre_nms_thresh / (1.0 - pre_nms_thresh))

    per_level = []
    for stride, cls_l, bbox_l in zip(strides, cls_scores, reg_boxes):
        per_level.append(pdnet_level_candidates(
            cls_l, bbox_l, image_sizes_flat, stride, pre_nms_top_n))

    top_logits = jnp.concatenate([p[0] for p in per_level], axis=1)
    scores = jnp.concatenate([p[1] for p in per_level], axis=1)
    boxes = jnp.concatenate([p[2] for p in per_level], axis=1)
    labels = jnp.concatenate([p[3] for p in per_level], axis=1)

    # candidate_masks > pre_nms_thresh with count clamped to pre_nms_top_n:
    # per-level top-k already caps the count; threshold is applied here in logit
    # space on the survivors.
    valid = top_logits > logit_thresh
    # remove_small_boxes(min_size)   (TO_REMOVE = 1)
    ws = boxes[..., 2] - boxes[..., 0] + 1.0
    hs = boxes[..., 3] - boxes[..., 1] + 1.0
    valid = valid & (ws >= float(min_size)) & (hs >= float(min_size))

    # TODO(synk): boxlist_ml_nms + kthvalue-based fpn_post_nms_top_n trimming are
    # sequential, data-dependent ops with no clean Pallas equivalent; the padded
    # candidate set (scores, boxes, labels, valid) is returned instead.
    return scores, boxes, labels, valid


if __name__ == "__main__":
    # The module has no learned weights; __init__ only stores thresholds /
    # counts / strides — set deterministically here.
    pre_nms_thresh = 0.5
    pre_nms_top_n = 32
    min_size = 0
    strides = (8, 16)

    key = jax.random.PRNGKey(0)
    N, C, H, W = 2, 4, 16, 16
    image_sizes = jnp.array([[128, 120], [112, 128]], dtype=jnp.int32)  # (h, w)

    cls_scores, reg_boxes = [], []
    for li, _stride in enumerate(strides):
        h_l, w_l = H // (2 ** li), W // (2 ** li)
        key, k1, k2 = jax.random.split(key, 3)
        cls_scores.append(jax.random.normal(k1, (N, C, h_l, w_l), jnp.float32))
        reg_boxes.append(
            jax.random.uniform(k2, (N, 4, h_l, w_l), jnp.float32) * 20.0)

    out = pdnet_postprocess(cls_scores, reg_boxes, image_sizes, strides,
                            pre_nms_thresh, pre_nms_top_n, min_size)
    jax.block_until_ready(out)
    print("KERNEL_OK")
</pallas_src>

<mosaic_0001>
module attributes {stable_mosaic.version = 11 : i64} {
  func.func @_decode_topk_kernel(%arg0: i32, %arg1: memref<4xi32, #tpu.memory_space<smem>>, %arg2: memref<1x1x32xf32, #tpu.memory_space<vmem>>, %arg3: memref<1x4x32xf32, #tpu.memory_space<vmem>>, %arg4: memref<1x1x32xf32, #tpu.memory_space<vmem>>, %arg5: memref<1x4x32xf32, #tpu.memory_space<vmem>>) attributes {dimension_semantics = [#tpu.dimension_semantics<parallel>], iteration_bounds = array<i64: 2>, scalar_prefetch = 1 : i64, scratch_operands = 0 : i64, tpu.core_type = #tpu.core_type<tc>, window_params = [{transform_indices = @transform_0, window_bounds = array<i64: 1, 1, 32>}, {transform_indices = @transform_1, window_bounds = array<i64: 1, 4, 32>}, {transform_indices = @transform_2, window_bounds = array<i64: 1, 1, 32>}, {transform_indices = @transform_3, window_bounds = array<i64: 1, 4, 32>}]} {
    %c2_i32 = arith.constant 2 : i32
    %0 = arith.muli %c2_i32, %arg0 : i32
    %1 = arith.index_cast %0 : i32 to index
    %2 = memref.load %arg1[%1] : memref<4xi32, #tpu.memory_space<smem>>
    %3 = arith.sitofp %2 : i32 to f32
    %c2_i32_0 = arith.constant 2 : i32
    %4 = arith.muli %c2_i32_0, %arg0 : i32
    %c1_i32 = arith.constant 1 : i32
    %5 = arith.addi %4, %c1_i32 : i32
    %6 = arith.index_cast %5 : i32 to index
    %7 = memref.load %arg1[%6] : memref<4xi32, #tpu.memory_space<smem>>
    %8 = arith.sitofp %7 : i32 to f32
    %c0 = arith.constant 0 : index
    %c0_1 = arith.constant 0 : index
    %c0_2 = arith.constant 0 : index
    %9 = vector.load %arg2[%c0, %c0_1, %c0_2] : memref<1x1x32xf32, #tpu.memory_space<vmem>>, vector<1x1x32xf32>
    %10 = arith.negf %9 : vector<1x1x32xf32>
    %11 = math.exp %10 : vector<1x1x32xf32>
    %cst = arith.constant 1.000000e+00 : f32
    %12 = vector.broadcast %cst : f32 to vector<1x1x32xf32>
    %13 = arith.addf %12, %11 : vector<1x1x32xf32>
    %14 = arith.divf %12, %13 : vector<1x1x32xf32>
    %c0_3 = arith.constant 0 : index
    %c0_4 = arith.constant 0 : index
    %c0_5 = arith.constant 0 : index
    %15 = vector.load %arg4[%c0_3, %c0_4, %c0_5] : memref<1x1x32xf32, #tpu.memory_space<vmem>>, vector<1x1x32xf32>
    tpu.vector_store %arg4[%c0_3, %c0_4, %c0_5], %14 {strides = array<i32>} : memref<1x1x32xf32, #tpu.memory_space<vmem>>, vector<1x1x32xf32>,
    %c0_6 = arith.constant 0 : index
    %c0_7 = arith.constant 0 : index
    %c0_8 = arith.constant 0 : index
    %16 = vector.load %arg3[%c0_6, %c0_7, %c0_8] : memref<1x4x32xf32, #tpu.memory_space<vmem>>, vector<1x1x32xf32>
    %cst_9 = arith.constant 8.000000e+00 : f32
    %17 = vector.broadcast %cst_9 : f32 to vector<1x1x32xf32>
    %18 = arith.mulf %16, %17 : vector<1x1x32xf32>
    %19 = vector.broadcast %3 : f32 to vector<1x1x32xf32>
    %20 = arith.minimumf %18, %19 : vector<1x1x32xf32>
    %c0_10 = arith.constant 0 : index
    %c1 = arith.constant 1 : index
    %c0_11 = arith.constant 0 : index
    %21 = vector.load %arg3[%c0_10, %c1, %c0_11] : memref<1x4x32xf32, #tpu.memory_space<vmem>>, vector<1x1x32xf32>
    %cst_12 = arith.constant 8.000000e+00 : f32
    %22 = vector.broadcast %cst_12 : f32 to vector<1x1x32xf32>
    %23 = arith.mulf %21, %22 : vector<1x1x32xf32>
    %24 = vector.broadcast %8 : f32 to vector<1x1x32xf32>
    %25 = arith.minimumf %23, %24 : vector<1x1x32xf32>
    %c0_13 = arith.constant 0 : index
    %c2 = arith.constant 2 : index
    %c0_14 = arith.constant 0 : index
    %26 = vector.load %arg3[%c0_13, %c2, %c0_14] : memref<1x4x32xf32, #tpu.memory_space<vmem>>, vector<1x1x32xf32>
    %cst_15 = arith.constant 8.000000e+00 : f32
    %27 = vector.broadcast %cst_15 : f32 to vector<1x1x32xf32>
    %28 = arith.mulf %26, %27 : vector<1x1x32xf32>
    %29 = vector.broadcast %3 : f32 to vector<1x1x32xf32>
    %30 = arith.minimumf %28, %29 : vector<1x1x32xf32>
    %c0_16 = arith.constant 0 : index
    %c3 = arith.constant 3 : index
    %c0_17 = arith.constant 0 : index
    %31 = vector.load %arg3[%c0_16, %c3, %c0_17] : memref<1x4x32xf32, #tpu.memory_space<vmem>>, vector<1x1x32xf32>
    %cst_18 = arith.constant 8.000000e+00 : f32
    %32 = vector.broadcast %cst_18 : f32 to vector<1x1x32xf32>
    %33 = arith.mulf %31, %32 : vector<1x1x32xf32>
    %34 = vector.broadcast %8 : f32 to vector<1x1x32xf32>
    %35 = arith.minimumf %33, %34 : vector<1x1x32xf32>
    %36 = arith.maximumf %25, %35 : vector<1x1x32xf32>
    %37 = arith.maximumf %20, %30 : vector<1x1x32xf32>
    %cst_19 = arith.constant 1.000000e+00 : f32
    %38 = arith.subf %8, %cst_19 : f32
    %cst_20 = arith.constant 0.000000e+00 : f32
    %39 = vector.broadcast %cst_20 : f32 to vector<1x1x32xf32>
    %40 = arith.maximumf %39, %25 : vector<1x1x32xf32>
    %41 = vector.broadcast %38 : f32 to vector<1x1x32xf32>
    %42 = arith.minimumf %41, %40 : vector<1x1x32xf32>
    %cst_21 = arith.constant 1.000000e+00 : f32
    %43 = arith.subf %3, %cst_21 : f32
    %cst_22 = arith.constant 0.000000e+00 : f32
    %44 = vector.broadcast %cst_22 : f32 to vector<1x1x32xf32>
    %45 = arith.maximumf %44, %20 : vector<1x1x32xf32>
    %46 = vector.broadcast %43 : f32 to vector<1x1x32xf32>
    %47 = arith.minimumf %46, %45 : vector<1x1x32xf32>
    %cst_23 = arith.constant 1.000000e+00 : f32
    %48 = arith.subf %8, %cst_23 : f32
    %cst_24 = arith.constant 0.000000e+00 : f32
    %49 = vector.broadcast %cst_24 : f32 to vector<1x1x32xf32>
    %50 = arith.maximumf %49, %36 : vector<1x1x32xf32>
    %51 = vector.broadcast %48 : f32 to vector<1x1x32xf32>
    %52 = arith.minimumf %51, %50 : vector<1x1x32xf32>
    %cst_25 = arith.constant 1.000000e+00 : f32
    %53 = arith.subf %3, %cst_25 : f32
    %cst_26 = arith.constant 0.000000e+00 : f32
    %54 = vector.broadcast %cst_26 : f32 to vector<1x1x32xf32>
    %55 = arith.maximumf %54, %37 : vector<1x1x32xf32>
    %56 = vector.broadcast %53 : f32 to vector<1x1x32xf32>
    %57 = arith.minimumf %56, %55 : vector<1x1x32xf32>
    %c0_27 = arith.constant 0 : index
    %c0_28 = arith.constant 0 : index
    %c0_29 = arith.constant 0 : index
    %58 = vector.load %arg5[%c0_27, %c0_28, %c0_29] : memref<1x4x32xf32, #tpu.memory_space<vmem>>, vector<1x1x32xf32>
    tpu.vector_store %arg5[%c0_27, %c0_28, %c0_29], %42 {strides = array<i32>} : memref<1x4x32xf32, #tpu.memory_space<vmem>>, vector<1x1x32xf32>,
    %c0_30 = arith.constant 0 : index
    %c1_31 = arith.constant 1 : index
    %c0_32 = arith.constant 0 : index
    %59 = vector.load %arg5[%c0_30, %c1_31, %c0_32] : memref<1x4x32xf32, #tpu.memory_space<vmem>>, vector<1x1x32xf32>
    tpu.vector_store %arg5[%c0_30, %c1_31, %c0_32], %47 {strides = array<i32>} : memref<1x4x32xf32, #tpu.memory_space<vmem>>, vector<1x1x32xf32>,
    %c0_33 = arith.constant 0 : index
    %c2_34 = arith.constant 2 : index
    %c0_35 = arith.constant 0 : index
    %60 = vector.load %arg5[%c0_33, %c2_34, %c0_35] : memref<1x4x32xf32, #tpu.memory_space<vmem>>, vector<1x1x32xf32>
    tpu.vector_store %arg5[%c0_33, %c2_34, %c0_35], %52 {strides = array<i32>} : memref<1x4x32xf32, #tpu.memory_space<vmem>>, vector<1x1x32xf32>,
    %c0_36 = arith.constant 0 : index
    %c3_37 = arith.constant 3 : index
    %c0_38 = arith.constant 0 : index
    %61 = vector.load %arg5[%c0_36, %c3_37, %c0_38] : memref<1x4x32xf32, #tpu.memory_space<vmem>>, vector<1x1x32xf32>
    tpu.vector_store %arg5[%c0_36, %c3_37, %c0_38], %57 {strides = array<i32>} : memref<1x4x32xf32, #tpu.memory_space<vmem>>, vector<1x1x32xf32>,
    return
  }
  func.func @transform_0(%arg0: i32, %arg1: memref<4xi32, #tpu.memory_space<smem>>) -> (i32, i32, i32) {
    %c0_i32 = arith.constant 0 : i32
    %c0_i32_0 = arith.constant 0 : i32
    %c0_i32_1 = arith.constant 0 : i32
    return %arg0, %c0_i32, %c0_i32_0 : i32, i32, i32
  }
  func.func @transform_1(%arg0: i32, %arg1: memref<4xi32, #tpu.memory_space<smem>>) -> (i32, i32, i32) {
    %c0_i32 = arith.constant 0 : i32
    %c0_i32_0 = arith.constant 0 : i32
    %c0_i32_1 = arith.constant 0 : i32
    return %arg0, %c0_i32, %c0_i32_0 : i32, i32, i32
  }
  func.func @transform_2(%arg0: i32, %arg1: memref<4xi32, #tpu.memory_space<smem>>) -> (i32, i32, i32) {
    %c0_i32 = arith.constant 0 : i32
    %c0_i32_0 = arith.constant 0 : i32
    %c0_i32_1 = arith.constant 0 : i32
    return %arg0, %c0_i32, %c0_i32_0 : i32, i32, i32
  }
  func.func @transform_3(%arg0: i32, %arg1: memref<4xi32, #tpu.memory_space<smem>>) -> (i32, i32, i32) {
    %c0_i32 = arith.constant 0 : i32
    %c0_i32_0 = arith.constant 0 : i32
    %c0_i32_1 = arith.constant 0 : i32
    return %arg0, %c0_i32, %c0_i32_0 : i32, i32, i32
  }
}

</mosaic_0001>

<bundles_post_ra>
// kernel: tpu_custom_call.1
= control target key start
LH: loop header
LB: loop body
LE: loop exit
PB: predicated region body
PF: predicated region fallthrough
CT: control target
= control target key end

     0   :  { %s707_s18 = smov [#allocation3]   ;;  %s925_s0 = inlined_call_operand.hbm [shape: s32[4], index: 0, kind: input, shape index: {}]   ;;  %s926_s1 = inlined_call_operand.hbm [shape: f32[2,1,32], index: 1, kind: input, shape index: {}]   ;;  %s927_s2 = inlined_call_operand.hbm [shape: f32[2,4,32], index: 2, kind: input, shape index: {}]   ;;  %s928_s3 = inlined_call_operand.hbm [shape: f32[2,1,32], index: 3, kind: output, shape index: {0}]   ;;  %s929_s4 = inlined_call_operand.hbm [shape: f32[2,4,32], index: 4, kind: output, shape index: {1}]  }
   0x1   :  { %s11_s17 = sshll.u32 %s925_s0, 4  ;;  %s12_s17 = int_to_ptr.hbm [resolvable:$true] %s11_s17 }
   0x2   :  { %14 = dma.hbm_to_smem %s12_s17, 16, %s707_s18, [#allocation2] }
   0x3   :  { %673 = dma.done.wait [#allocation2], 16 }
   0x4   :  { %674 = vsyncadd [#allocation2], 4294967280 }
   0x5   :  { %17 = sfence }
   0x6   :  { %18 = vsyncpa [#allocation5], 0 }
   0x7   :  { %20 = vsyncpa [#allocation5 + $0x1], 0 }
   0x8   :  { %21 = vsyncpa [#allocation8], 0 }
   0x9   :  { %23 = vsyncpa [#allocation8 + $0x1], 0 }
   0xa   :  { %24 = vsyncpa [#allocation6], 0 }
   0xb   :  { %26 = vsyncpa [#allocation6 + $0x1], 0 }
   0xc   :  { %27 = vsyncpa [#allocation11], 0 }
   0xd   :  { %29 = vsyncpa [#allocation11 + $0x1], 0  ;;  %s736_s19 = smov 0   ;;  %s738_s20 = smov 0  }
   0xe   :  { %s740_s21 = smov 0   ;;  %s742_s0 = smov 0  }
   0xf LB: > { %s757_s22 = sadd.s32 4294967295, %s705_s0   ;;  %s452_s23 = sadd.s32 4294967294, %s705_s0   ;;  %s705_s0 = sphi %s742_s0, %s940_s0   ;;  %s701_s21 = sphi %s740_s21, %s939_s21   ;;  %s697_s20 = sphi %s738_s20, %s938_s20   ;;  %s693_s19 = sphi %s736_s19, %s937_s19  }
  0x10   : > { %s761_s24 = sadd.s32 1, %s705_s0   ;;  %s42_s25 = sadd.s32 1, %s701_s21 }
  0x11   : > { %s39_s26 = ssub.s32 %s705_s0, %s761_s24  ;;  %p49_p0 = scmp.ne.s32.totalorder %s701_s21, %s697_s20 }
  0x12   : > { %p40_p1 = scmp.eq.s32.totalorder %s39_s26, 0  ;;  %p50_p2 = scmp.eq.s32.totalorder %s705_s0, 0 }
  0x13   : > { %p55_p3 = scmp.ne.s32.totalorder %s697_s20, %s693_s19  ;;  %p56_p4 = scmp.eq.s32.totalorder %s757_s22, 0 }
  0x14   : > { %s773_s27 = scalar_select %p40_p1, %s701_s21, %s42_s25  }
  0x15   : > { %p775_p5 = por %p50_p2, %p49_p0  ;;  %p779_p6 = por %p56_p4, %p55_p3 }
  0x16   : > { %p105_p7 = scmp.eq.s32.totalorder %s757_s22, 1  ;;  %p111_p8 = scmp.eq.s32.totalorder %s452_s23, 1 }
  0x17   : > { %p490_p10 = scmp.lt.s32.totalorder %s705_s0, 2  ;;  %s795_s6 = sand.u32 1, %s701_s21  }
  0x18   : > { %p786_p11 = por %p105_p7, %p49_p0  ;;  %p790_p12 = por %p111_p8, %p55_p3 }
  0x19   : > { %s163_s9 = scalar_lea.hbm %s926_s1, %s705_s0  ;;  %s160_s11 = scalar_lea.vmem [#allocation4], %s795_s6 }
  0x1a   : > { %s165_s10 = sshll.u32 %s163_s9, 4  ;;  %s167_s12 = sshll.u32 %s160_s11, 4  ;;  %s166_s10 = int_to_ptr.hbm [resolvable:$true] %s165_s10  ;;  %s168_s12 = int_to_ptr.vmem [resolvable:$true] %s167_s12 }
  0x1b   : > { %p804_p13 = pnand %p490_p10, %p775_p5  ;;  %p457_p0 = scmp.ge.s32.totalorder %s705_s0, 1 }
  0x1c   : > { %p191_p1 = scmp.lt.s32.totalorder %s705_s0, 3  ;;  %s455_s14 = sshll.u32 %s795_s6, 2 }
  0x1d   : > { %s158_s15 = scalar_lea.sflag [#allocation5], %s795_s6  ;;  %s541_s16 = sshra.s32 %s166_s10, 4  ;;  %s542_s16 = int_to_ptr.hbm [resolvable:$true] %s541_s16 }
  0x1e   : > { %s543_s17 = scalar_lea.hbm %s542_s16, 1  ;;  %p545_p3 = pneg %p804_p13 }
  0x1f   : > { %p544_p2 = scmp.ne.s32.totalorder %s542_s16, %s543_s17  ;;  %s548_s25 = scalar_lea.hbm %s926_s1, 2 }
  0x20   : > { %p549_p5 = scmp.lt.s32.totalorder %s542_s16, %s926_s1  ;;  %p550_p8 = scmp.lt.s32.totalorder %s548_s25, %s543_s17 }
  0x21   : > { %p546_p4 = pnand %p545_p3, %p544_p2 }
  0x22   : > { %p551_p10 = por %p550_p8, %p549_p5 }
  0x23   : > { %p547_p7 = pneg %p546_p4 }
  0x25   : > { %p552_p9 = pnand %p551_p10, %p547_p7 }
  0x27   : > { %555 = shalt.err (!%p552_p9)
}
  0x28   : > { %479 = dma.hbm_to_vmem [thread:$0]  (!%p804_p13), %s166_s10, 16, %s168_s12, %s158_s15  }
  0x29   : > { %p829_p2 = pnand %p457_p0, %p191_p1  ;;  %s456_s8 = sshll.u32 %s705_s0, 2 }
  0x2a   : > { %s178_s9 = scalar_lea.vmem [#allocation7], %s455_s14  ;;  %s182_s18 = scalar_lea.hbm %s927_s2, %s456_s8 }
  0x2b   : > { %s186_s11 = sshll.u32 %s178_s9, 4  ;;  %s184_s23 = sshll.u32 %s182_s18, 4  ;;  %s187_s11 = int_to_ptr.vmem [resolvable:$true] %s186_s11  ;;  %s185_s23 = int_to_ptr.hbm [resolvable:$true] %s184_s23 }
  0x2c   : > { %s175_s25 = scalar_lea.sflag [#allocation8], %s795_s6  ;;  %s571_s26 = sshra.s32 %s185_s23, 4  ;;  %s572_s26 = int_to_ptr.hbm [resolvable:$true] %s571_s26 }
  0x2d   : > { %s573_s10 = scalar_lea.hbm %s572_s26, 4  ;;  %s578_s14 = scalar_lea.hbm %s927_s2, 8 }
  0x2e   : > { %p574_p9 = scmp.ne.s32.totalorder %s572_s26, %s573_s10  ;;  %p579_p4 = scmp.lt.s32.totalorder %s572_s26, %s927_s2 }
  0x2f   : > { %p580_p7 = scmp.lt.s32.totalorder %s578_s14, %s573_s10 }
  0x30   : > { %p576_p0 = pnand %p574_p9, %p545_p3 }
  0x31   : > { %p581_p5 = por %p580_p7, %p579_p4 }
  0x32   : > { %p577_p1 = pneg %p576_p0 }
  0x34   : > { %p582_p8 = pnand %p581_p5, %p577_p1 }
  0x36   : > { %585 = shalt.err (!%p582_p8)
}
  0x37   : > { %482 = dma.hbm_to_vmem [thread:$0]  (!%p804_p13), %s185_s23, 64, %s187_s11, %s175_s25  }
  0x38   : > { %195 = sbr.rel (%p829_p2) target bundleno = 101 (0x65), region = 28  ;;  %s852_s6 = sand.u32 (!%p829_p2), 1, %s697_s20  }
  0x39   : > { %s198_s8 = scalar_lea.sflag (!%p829_p2), [#allocation5], %s852_s6  ;;  %s200_s16 = scalar_lea.vmem (!%p829_p2), [#allocation4], %s852_s6 }
  0x3d   : > { %676 = dma.done.wait (%p779_p6), %s198_s8, 16  }
  0x3e   : > { %678 = vsyncadd (%p779_p6), %s198_s8, 4294967280  ;;  %s458_s13 = sshll.u32 %s852_s6, 2  ;;  %s207_s7 = scalar_lea.sflag [#allocation8], %s852_s6 }
  0x3f   : > { %s210_s11 = scalar_lea.vmem [#allocation7], %s458_s13 }
  0x40   : > { %680 = dma.done.wait (%p779_p6), %s207_s7, 64  }
  0x41   : > { %682 = vsyncadd (%p779_p6), %s207_s7, 4294967232  ;;  %s460_s17 = sshll.u32 %s757_s22, 1  ;;  %v248_v0 = vld [vmem:[%s200_s16] sm:$0x1]  ;;  %v274_v1 = vld [vmem:[%s210_s11 + $0x1] sm:$0x1] }
  0x42   : > { %s245_s18 = sadd.s32 1, %s460_s17  ;;  %s243_s25 = sld [smem:[#allocation3 + %s460_s17]]  ;;  %v270_v2 = vld [vmem:[%s210_s11] sm:$0x1]  ;;  %v461_v3 = vmul.f32 -1.442695, %v248_v0 }
  0x43   : > { %s246_s23 = sld [smem:[#allocation3 + %s245_s18]]  ;;  %v275_v4 = vmul.f32 8.0, %v274_v1  ;;  %v281_v5 = vld [vmem:[%s210_s11 + $0x3] sm:$0x1]  ;;  %v271_v6 = vmul.f32 8.0, %v270_v2  ;;  %s465_s12 = sshll.u32 %s757_s22, 2 }
  0x44   : > { %v282_v7 = vmul.f32 8.0, %v281_v5  ;;  %v278_v8 = vld [vmem:[%s210_s11 + $0x2] sm:$0x1]  ;;  %525 = vpow2.f32 %v461_v3  ;;  %s330_s9 = scalar_lea.hbm %s929_s4, %s465_s12  ;;  %vm268_vm0 = vcmask 253952   ;;  %s241_s8 = scalar_lea.vmem [#allocation10], %s458_s13 }
  0x45   : > { %v279_v9 = vmul.f32 8.0, %v278_v8  ;;  %s332_s16 = sshll.u32 %s241_s8, 4  ;;  %s334_s7 = sshll.u32 %s330_s9, 4  ;;  %s333_s16 = int_to_ptr.vmem [resolvable:$true] %s332_s16  ;;  %s335_s7 = int_to_ptr.hbm [resolvable:$true] %s334_s7 }
  0x46   : > { %s307_s13 = scalar_lea.sflag [#allocation11], %s852_s6  ;;  %s615_s11 = sshra.s32 %s335_s7, 4  ;;  %s616_s11 = int_to_ptr.hbm [resolvable:$true] %s615_s11 }
  0x47   : > { %s617_s17 = scalar_lea.hbm %s616_s11, 4  ;;  %p622_p10 = scmp.lt.s32.totalorder %s616_s11, %s929_s4 }
  0x48   : > { %s244_s10 = scvt.s32.f32 %s243_s25  ;;  %p618_p6 = scmp.ne.s32.totalorder %s616_s11, %s617_s17 }
  0x49   : > { %s247_s26 = scvt.s32.f32 %s246_s23  ;;  %s621_s25 = scalar_lea.hbm %s929_s4, 8 }
  0x4a   : > { %v272_v12 = vstv %s244_s10  ;;  %s463_s15 = sadd.f32 -1.0, %s244_s10  ;;  %v526_v22 = vpop.eup %525  ;;  %p619_p13 = pnand %p618_p6, %p786_p11 }
  0x4b   : > { %v276_v10 = vstv %s247_s26  ;;  %s462_s29 = sadd.f32 -1.0, %s247_s26  ;;  %v273_v15 = vmin.f32 %v271_v6, %v272_v12  ;;  %v280_v16 = vmin.f32 %v279_v9, %v272_v12  ;;  %v252_v25 = vadd.f32 1.0, %v526_v22  ;;  %p623_p2 = scmp.lt.s32.totalorder %s621_s25, %s617_s17 }
  0x4c   : > { %v277_v11 = vmin.f32 %v275_v4, %v276_v10  ;;  %v283_v13 = vmin.f32 %v282_v7, %v276_v10  ;;  %v292_v18 = vstv %s463_s15  ;;  %p620_p3 = pneg %p619_p13 }
  0x4d   : > { %v288_v14 = vstv %s462_s29  ;;  %v291_v20 = vmax.f32 %v273_v15, 0.0  ;;  %v285_v21 = vmax.f32 %v273_v15, %v280_v16  ;;  %527 = vrcp.f32 %v252_v25  ;;  %p624_p9 = por %p623_p2, %p622_p10 }
  0x4e   : > { %v287_v17 = vmax.f32 %v277_v11, 0.0  ;;  %v284_v19 = vmax.f32 %v277_v11, %v283_v13 }
  0x4f   : > { %v293_v26 = vmin.f32 %v292_v18, %v291_v20  ;;  %v296_v27 = vmax.f32 %v285_v21, 0.0  ;;  %p625_p0 = pnand %p624_p9, %p620_p3 }
  0x50   : > { %v289_v23 = vmin.f32 %v288_v14, %v287_v17  ;;  %v294_v24 = vmax.f32 %v284_v19, 0.0 }
  0x51   : > { %299 = vst.msk [vmem:[%s241_s8 + $0x1] sm:$0x1] %vm268_vm0, %v293_v26  ;;  %v297_v29 = vmin.f32 %v292_v18, %v296_v27 }
  0x52   : > { %298 = vst.msk [vmem:[%s241_s8] sm:$0x1] %vm268_vm0, %v289_v23  ;;  %v295_v28 = vmin.f32 %v288_v14, %v294_v24 }
  0x53   : > { %301 = vst.msk [vmem:[%s241_s8 + $0x3] sm:$0x1] %vm268_vm0, %v297_v29 }
  0x54   : > { %300 = vst.msk [vmem:[%s241_s8 + $0x2] sm:$0x1] %vm268_vm0, %v295_v28 }
  0x55   : > { %628 = shalt.err (!%p625_p0)
}
  0x56   : > { %473 = dma.vmem_to_hbm [thread:$0]  (%p786_p11), %s333_s16, 64, %s335_s7, %s307_s13   ;;  %v528_v30 = vpop.eup %527  ;;  %v264_v32 = vand.u32 2147483648, %v252_v25  ;;  %vm258_vm1 = vweird.f32 %v252_v25  ;;  %v262_v34 = vand.u32 2147483647, %v252_v25 }
  0x57   : > { %v254_v31 = vmul.f32 %v528_v30, %v252_v25  ;;  %vm259_vm2 = vweird.f32 %v528_v30  ;;  %s316_s15 = scalar_lea.hbm %s928_s3, %s757_s22  ;;  %s234_s14 = scalar_lea.vmem [#allocation9], %s852_s6 }
  0x58   : > { %s318_s28 = sshll.u32 %s234_s14, 4  ;;  %vm260_vm3 = vmor %vm258_vm1, %vm259_vm2  ;;  %v265_v36 = vor.u32 1.1754944e-38, %v264_v32  ;;  %s320_s9 = sshll.u32 %s316_s15, 4  ;;  %vm263_vm4 = vcmp.eq.f32.partialorder %v262_v34, 8.507059e+37  ;;  %s319_s28 = int_to_ptr.vmem [resolvable:$true] %s318_s28  ;;  %s321_s9 = int_to_ptr.hbm [resolvable:$true] %s320_s9 }
  0x59   : > { %v255_v33 = vsub.f32 1.0, %v254_v31  ;;  %s303_s8 = scalar_lea.sflag [#allocation6], %s852_s6  ;;  %s643_s16 = sshra.s32 %s321_s9, 4  ;;  %s644_s16 = int_to_ptr.hbm [resolvable:$true] %s643_s16 }
  0x5a   : > { %s645_s7 = scalar_lea.hbm %s644_s16, 1  ;;  %s649_s11 = scalar_lea.hbm %s928_s3, 2 }
  0x5b   : > { %v256_v35 = vmul.f32 %v528_v30, %v255_v33  ;;  %p646_p1 = scmp.ne.s32.totalorder %s644_s16, %s645_s7  ;;  %p650_p5 = scmp.lt.s32.totalorder %s644_s16, %s928_s3 }
  0x5c   : > { %p651_p8 = scmp.lt.s32.totalorder %s649_s11, %s645_s7 }
  0x5d   : > { %v257_v37 = vadd.f32 %v528_v30, %v256_v35  ;;  %p647_p4 = pnand %p646_p1, %p786_p11 }
  0x5e   : > { %p652_p6 = por %p651_p8, %p650_p5 }
  0x5f   : > { %v261_v38 = vsel %vm260_vm3, %v528_v30, %v257_v37  ;;  %p648_p7 = pneg %p647_p4 }
  0x60   : > { %v266_v39 = vsel %vm263_vm4, %v265_v36, %v261_v38 }
  0x61   : > { %269 = vst.msk [vmem:[%s234_s14] sm:$0x1] %vm268_vm0, %v266_v39  ;;  %p653_p13 = pnand %p652_p6, %p648_p7 }
  0x63   : > { %656 = shalt.err (!%p653_p13)
}
  0x64   : > { %472 = dma.vmem_to_hbm [thread:$0]  (%p786_p11), %s319_s28, 16, %s321_s9, %s303_s8  }
  0x65 PF: > { %s346_s6 = sand.u32 1, %s693_s19   ;;  %p936_p3 = scmp.ge.s32.totalorder %s705_s0, 2 }
  0x66   : > { %s347_s23 = scalar_lea.sflag [#allocation6], %s346_s6 }
  0x67   : > { %p484_p10 = pnand %p936_p3, %p790_p12 }
  0x69   : > { %p485_p2 = pneg %p484_p10 }
  0x6b   : > { %684 = dma.done.wait (%p485_p2), %s347_s23, 16  }
  0x6c   : > { %686 = vsyncadd (%p485_p2), %s347_s23, 4294967280  ;;  %s356_s25 = scalar_lea.sflag [#allocation11], %s346_s6 }
  0x6d   : > { %688 = dma.done.wait (%p485_p2), %s356_s25, 64  }
  0x6e   : > { %690 = vsyncadd (%p485_p2), %s356_s25, 4294967232  ;;  %p32_p11 = scmp.ge.s32.totalorder %s761_s24, 4   ;;  %s937_s19 = smov %s697_s20 }
  0x6f   : > { %s938_s20 = smov %s701_s21  ;;  %s939_s21 = smov %s773_s27 }
  0x70   : > { %s940_s0 = smov %s761_s24  ;;  %34 = sbr.rel (!%p32_p11) target bundleno = 15 (0xf), region = 103 }
  0x75   :  { %362 = vsyncpa [#allocation5], 1 }
  0x76   :  { %364 = vsyncpa [#allocation5 + $0x1], 1 }
  0x77   :  { %365 = vsyncpa [#allocation8], 1 }
  0x78   :  { %367 = vsyncpa [#allocation8 + $0x1], 1 }
  0x79   :  { %368 = vsyncpa [#allocation6], 1 }
  0x7a   :  { %370 = vsyncpa [#allocation6 + $0x1], 1 }
  0x7b   :  { %371 = vsyncpa [#allocation11], 1 }
  0x7c   :  { %373 = vsyncpa [#allocation11 + $0x1], 1 }

</bundles_post_ra>
